<compile_context>
chip_gen: v7x
topology: tpu7x:2x2x1
jax: 0.10.0
libtpu: 0.0.40
codegen_flags: <defaults>
</compile_context>

<pallas_src>
import functools
import math

import jax
import jax.numpy as jnp
from jax.experimental import pallas as pl
from jax.experimental.pallas import tpu as pltpu


def _perturbator_kernel(phi, action_lo, action_hi,
                        state_ref, act_ref,
                        w1s_ref, w1a_ref, b1_ref,
                        w2_ref, b2_ref, w3_ref, b3_ref,
                        out_ref):
    """Fused 3-layer MLP + phi*tanh perturbation + residual add (+ optional clamp)."""
    w_dtype = w1s_ref.dtype                     # bf16 weights
    state = state_ref[...]                      # [TB, input_dim]  f32
    action = act_ref[...]                       # [TB, action_dim] f32

    # fc1 on the un-concatenated inputs: cat([s, a]) @ W1 == s @ W1_s + a @ W1_a
    h = (jnp.dot(state.astype(w_dtype), w1s_ref[...],
                 preferred_element_type=jnp.float32)
         + jnp.dot(action.astype(w_dtype), w1a_ref[...],
                   preferred_element_type=jnp.float32)
         + b1_ref[...])
    h = jnp.maximum(h, 0.0)

    # fc2 + ReLU
    h = jnp.dot(h.astype(w_dtype), w2_ref[...],
                preferred_element_type=jnp.float32) + b2_ref[...]
    h = jnp.maximum(h, 0.0)

    # fc3
    a = jnp.dot(h.astype(w_dtype), w3_ref[...],
                preferred_element_type=jnp.float32) + b3_ref[...]

    # phi * tanh(a)   (phi static -> matches `if self.phi is not None`)
    if phi is not None:
        a = phi * jnp.tanh(a)

    act = action + a

    # optional clamp (matches `if self.action_range is not None`)
    # NOTE: phi / action_range are baked in as constants; pass them as SMEM
    # scalars instead if they vary at runtime (avoids recompiles).
    if action_lo is not None:
        act = jnp.clip(act, action_lo, action_hi)

    out_ref[...] = act.astype(out_ref.dtype)


def perturbator_forward(state, action, params, *, phi=0.05, action_range=None,
                        tile_b=512):
    """JAX wrapper: one fused pallas_call over a batch grid (no concat)."""
    w1s, w1a, b1, w2, b2, w3, b3 = params
    B, action_dim = action.shape
    _, input_dim = state.shape

    # Batch tile: whole batch if small, else a multiple-of-8 tile (f32 sublane).
    tb = B if B <= tile_b else tile_b
    grid = (pl.cdiv(B, tb),)

    lo, hi = ((None, None) if action_range is None
              else (float(action_range[0]), float(action_range[1])))
    kernel = functools.partial(_perturbator_kernel, phi, lo, hi)

    def row_spec(d):                       # streamed [tb, d] tiles (double-buffered)
        return pl.BlockSpec((tb, d), lambda i: (i, 0))

    def fixed(shp):                        # VMEM-resident across the whole grid
        return pl.BlockSpec(shp, lambda i: (0, 0))

    # VMEM budget: resident bf16 weights + double-buffered activation tiles, with
    # headroom; keeps us well inside v7x's 64 MiB physical VMEM.
    w_bytes = sum(int(x.size) * x.dtype.itemsize
                  for x in (w1s, w1a, b1, w2, b2, w3, b3))
    act_bytes = 2 * tb * (input_dim + 2 * action_dim) * 4
    vmem_limit = int(min(48 * 2**20, max(16 * 2**20, 2 * (w_bytes + act_bytes))))

    return pl.pallas_call(
        kernel,
        out_shape=jax.ShapeDtypeStruct((B, action_dim), action.dtype),
        grid=grid,
        in_specs=[
            row_spec(input_dim),                     # state   (streamed)
            row_spec(action_dim),                    # action  (streamed, aliased)
            fixed(w1s.shape), fixed(w1a.shape), fixed(b1.shape),
            fixed(w2.shape), fixed(b2.shape),
            fixed(w3.shape), fixed(b3.shape),
        ],
        out_specs=row_spec(action_dim),
        # Residual add writes over the `action` buffer (same shape/dtype/tiling).
        # For the full in-place win, donate `action` at the enclosing jit.
        input_output_aliases={1: 0},
        compiler_params=pltpu.CompilerParams(
            dimension_semantics=("parallel",),       # megacore-shard batch axis
            vmem_limit_bytes=vmem_limit),
    )(state, action, w1s, w1a, b1, w2, b2, w3, b3)


def init_perturbator_params(key, input_dim, action_dim, hidden_size,
                            w_dtype=jnp.bfloat16, b_dtype=jnp.float32):
    """Synthetic init. Weights (in_features, out_features) in bf16; fc1 weight is
    pre-split into state/action halves so the kernel avoids the concat. Biases
    kept 2D (1, out) in f32 (elementwise math stays f32)."""
    k1, k2, k3, k4, k5, k6 = jax.random.split(key, 6)
    d_in = input_dim + action_dim

    def lin(kw, kb, fan_in, fan_out):
        bound = 1.0 / math.sqrt(fan_in)
        w = jax.random.uniform(kw, (fan_in, fan_out), jnp.float32, -bound, bound)
        b = jax.random.uniform(kb, (1, fan_out), jnp.float32, -bound, bound)
        return w.astype(w_dtype), b.astype(b_dtype)

    w1, b1 = lin(k1, k2, d_in, hidden_size)
    w2, b2 = lin(k3, k4, hidden_size, hidden_size)
    w3, b3 = lin(k5, k6, hidden_size, action_dim)
    w1s, w1a = w1[:input_dim], w1[input_dim:]         # split fc1: no concat needed
    return (w1s, w1a, b1, w2, b2, w3, b3)


if __name__ == "__main__":
    key = jax.random.PRNGKey(0)
    kp, ks, ka = jax.random.split(key, 3)

    batch = 8
    input_dim = 16
    action_dim = 8
    hidden_size = 128          # lane-friendly (multiple of 128)
    phi = 0.05
    action_range = (-1.0, 1.0)

    params = init_perturbator_params(kp, input_dim, action_dim, hidden_size)
    state = jax.random.normal(ks, (batch, input_dim), jnp.float32)
    action = jax.random.normal(ka, (batch, action_dim), jnp.float32)

    out = perturbator_forward(state, action, params,
                              phi=phi, action_range=action_range)
    jax.block_until_ready(out)

    # Pure-JAX reference mirroring the kernel math (bf16 matmul operands,
    # f32 accumulation and elementwise).
    w1s, w1a, b1, w2, b2, w3, b3 = params
    wd = w1s.dtype
    h = (jnp.dot(state.astype(wd), w1s, preferred_element_type=jnp.float32)
         + jnp.dot(action.astype(wd), w1a, preferred_element_type=jnp.float32)
         + b1)
    h = jnp.maximum(h, 0.0)
    h = jnp.dot(h.astype(wd), w2, preferred_element_type=jnp.float32) + b2
    h = jnp.maximum(h, 0.0)
    a = jnp.dot(h.astype(wd), w3, preferred_element_type=jnp.float32) + b3
    a = phi * jnp.tanh(a)
    ref = jnp.clip(action + a, action_range[0], action_range[1])

    assert jnp.allclose(out, ref, atol=1e-3, rtol=1e-3), (
        float(jnp.max(jnp.abs(out - ref))))

    print("KERNEL_OK")
</pallas_src>

<mosaic_0001>
module attributes {stable_mosaic.version = 11 : i64} {
  func.func @_perturbator_kernel(%arg0: i32, %arg1: memref<8x16xf32, #tpu.memory_space<vmem>>, %arg2: memref<8x8xf32, #tpu.memory_space<vmem>>, %arg3: memref<16x128xbf16, #tpu.memory_space<vmem>>, %arg4: memref<8x128xbf16, #tpu.memory_space<vmem>>, %arg5: memref<1x128xf32, #tpu.memory_space<vmem>>, %arg6: memref<128x128xbf16, #tpu.memory_space<vmem>>, %arg7: memref<1x128xf32, #tpu.memory_space<vmem>>, %arg8: memref<128x8xbf16, #tpu.memory_space<vmem>>, %arg9: memref<1x8xf32, #tpu.memory_space<vmem>>, %arg10: memref<8x8xf32, #tpu.memory_space<vmem>>) attributes {dimension_semantics = [#tpu.dimension_semantics<parallel>], iteration_bounds = array<i64: 1>, scalar_prefetch = 0 : i64, scratch_operands = 0 : i64, tpu.core_type = #tpu.core_type<tc>, window_params = [{transform_indices = @transform_0, window_bounds = array<i64: 8, 16>}, {transform_indices = @transform_1, window_bounds = array<i64: 8, 8>}, {pipeline_mode = #tpu.pipeline_mode<synchronous>, transform_indices = @transform_2, window_bounds = array<i64: 16, 128>}, {pipeline_mode = #tpu.pipeline_mode<synchronous>, transform_indices = @transform_3, window_bounds = array<i64: 8, 128>}, {pipeline_mode = #tpu.pipeline_mode<synchronous>, transform_indices = @transform_4, window_bounds = array<i64: 1, 128>}, {pipeline_mode = #tpu.pipeline_mode<synchronous>, transform_indices = @transform_5, window_bounds = array<i64: 128, 128>}, {pipeline_mode = #tpu.pipeline_mode<synchronous>, transform_indices = @transform_6, window_bounds = array<i64: 1, 128>}, {pipeline_mode = #tpu.pipeline_mode<synchronous>, transform_indices = @transform_7, window_bounds = array<i64: 128, 8>}, {pipeline_mode = #tpu.pipeline_mode<synchronous>, transform_indices = @transform_8, window_bounds = array<i64: 1, 8>}, {transform_indices = @transform_9, window_bounds = array<i64: 8, 8>}]} {
    %c0 = arith.constant 0 : index
    %c0_0 = arith.constant 0 : index
    %0 = vector.load %arg1[%c0, %c0_0] : memref<8x16xf32, #tpu.memory_space<vmem>>, vector<8x16xf32>
    %c0_1 = arith.constant 0 : index
    %c0_2 = arith.constant 0 : index
    %1 = vector.load %arg2[%c0_1, %c0_2] : memref<8x8xf32, #tpu.memory_space<vmem>>, vector<8x8xf32>
    %2 = arith.truncf %0 : vector<8x16xf32> to vector<8x16xbf16>
    %c0_3 = arith.constant 0 : index
    %c0_4 = arith.constant 0 : index
    %3 = vector.load %arg3[%c0_3, %c0_4] : memref<16x128xbf16, #tpu.memory_space<vmem>>, vector<16x128xbf16>
    %cst = arith.constant dense<0.000000e+00> : vector<8x128xf32>
    %4 = tpu.matmul %2, %3, %cst {dimension_numbers = #tpu.dot_dimension_numbers<[1], [0], [0], [1], [0, 0, 1, 1], [], []>} : vector<8x16xbf16>, vector<16x128xbf16>, vector<8x128xf32> -> vector<8x128xf32>
    %5 = arith.truncf %1 : vector<8x8xf32> to vector<8x8xbf16>
    %c0_5 = arith.constant 0 : index
    %c0_6 = arith.constant 0 : index
    %6 = vector.load %arg4[%c0_5, %c0_6] : memref<8x128xbf16, #tpu.memory_space<vmem>>, vector<8x128xbf16>
    %cst_7 = arith.constant dense<0.000000e+00> : vector<8x128xf32>
    %7 = tpu.matmul %5, %6, %cst_7 {dimension_numbers = #tpu.dot_dimension_numbers<[1], [0], [0], [1], [0, 0, 1, 1], [], []>} : vector<8x8xbf16>, vector<8x128xbf16>, vector<8x128xf32> -> vector<8x128xf32>
    %8 = arith.addf %4, %7 : vector<8x128xf32>
    %c0_8 = arith.constant 0 : index
    %c0_9 = arith.constant 0 : index
    %9 = vector.load %arg5[%c0_8, %c0_9] : memref<1x128xf32, #tpu.memory_space<vmem>>, vector<1x128xf32>
    %10 = vector.broadcast %9 : vector<1x128xf32> to vector<8x128xf32>
    %11 = arith.addf %8, %10 : vector<8x128xf32>
    %cst_10 = arith.constant 0.000000e+00 : f32
    %12 = vector.broadcast %cst_10 : f32 to vector<8x128xf32>
    %13 = arith.maximumf %11, %12 : vector<8x128xf32>
    %14 = arith.truncf %13 : vector<8x128xf32> to vector<8x128xbf16>
    %c0_11 = arith.constant 0 : index
    %c0_12 = arith.constant 0 : index
    %15 = vector.load %arg6[%c0_11, %c0_12] : memref<128x128xbf16, #tpu.memory_space<vmem>>, vector<128x128xbf16>
    %cst_13 = arith.constant dense<0.000000e+00> : vector<8x128xf32>
    %16 = tpu.matmul %14, %15, %cst_13 {dimension_numbers = #tpu.dot_dimension_numbers<[1], [0], [0], [1], [0, 0, 1, 1], [], []>} : vector<8x128xbf16>, vector<128x128xbf16>, vector<8x128xf32> -> vector<8x128xf32>
    %c0_14 = arith.constant 0 : index
    %c0_15 = arith.constant 0 : index
    %17 = vector.load %arg7[%c0_14, %c0_15] : memref<1x128xf32, #tpu.memory_space<vmem>>, vector<1x128xf32>
    %18 = vector.broadcast %17 : vector<1x128xf32> to vector<8x128xf32>
    %19 = arith.addf %16, %18 : vector<8x128xf32>
    %cst_16 = arith.constant 0.000000e+00 : f32
    %20 = vector.broadcast %cst_16 : f32 to vector<8x128xf32>
    %21 = arith.maximumf %19, %20 : vector<8x128xf32>
    %22 = arith.truncf %21 : vector<8x128xf32> to vector<8x128xbf16>
    %c0_17 = arith.constant 0 : index
    %c0_18 = arith.constant 0 : index
    %23 = vector.load %arg8[%c0_17, %c0_18] : memref<128x8xbf16, #tpu.memory_space<vmem>>, vector<128x8xbf16>
    %cst_19 = arith.constant dense<0.000000e+00> : vector<8x8xf32>
    %24 = tpu.matmul %22, %23, %cst_19 {dimension_numbers = #tpu.dot_dimension_numbers<[1], [0], [0], [1], [0, 0, 1, 1], [], []>} : vector<8x128xbf16>, vector<128x8xbf16>, vector<8x8xf32> -> vector<8x8xf32>
    %c0_20 = arith.constant 0 : index
    %c0_21 = arith.constant 0 : index
    %25 = vector.load %arg9[%c0_20, %c0_21] : memref<1x8xf32, #tpu.memory_space<vmem>>, vector<1x8xf32>
    %26 = vector.broadcast %25 : vector<1x8xf32> to vector<8x8xf32>
    %27 = arith.addf %24, %26 : vector<8x8xf32>
    %28 = math.tanh %27 : vector<8x8xf32>
    %cst_22 = arith.constant 5.000000e-02 : f32
    %29 = vector.broadcast %cst_22 : f32 to vector<8x8xf32>
    %30 = arith.mulf %29, %28 : vector<8x8xf32>
    %31 = arith.addf %1, %30 : vector<8x8xf32>
    %cst_23 = arith.constant -1.000000e+00 : f32
    %cst_24 = arith.constant 1.000000e+00 : f32
    %32 = vector.broadcast %cst_23 : f32 to vector<8x8xf32>
    %33 = arith.maximumf %32, %31 : vector<8x8xf32>
    %34 = vector.broadcast %cst_24 : f32 to vector<8x8xf32>
    %35 = arith.minimumf %34, %33 : vector<8x8xf32>
    %c0_25 = arith.constant 0 : index
    %c0_26 = arith.constant 0 : index
    %36 = vector.load %arg10[%c0_25, %c0_26] : memref<8x8xf32, #tpu.memory_space<vmem>>, vector<8x8xf32>
    tpu.vector_store %arg10[%c0_25, %c0_26], %35 {strides = array<i32>} : memref<8x8xf32, #tpu.memory_space<vmem>>, vector<8x8xf32>,
    return
  }
  func.func @transform_0(%arg0: i32) -> (i32, i32) {
    %c0_i32 = arith.constant 0 : i32
    %c0_i32_0 = arith.constant 0 : i32
    return %arg0, %c0_i32 : i32, i32
  }
  func.func @transform_1(%arg0: i32) -> (i32, i32) {
    %c0_i32 = arith.constant 0 : i32
    %c0_i32_0 = arith.constant 0 : i32
    return %arg0, %c0_i32 : i32, i32
  }
  func.func @transform_2(%arg0: i32) -> (i32, i32) {
    %c0_i32 = arith.constant 0 : i32
    %c0_i32_0 = arith.constant 0 : i32
    %c0_i32_1 = arith.constant 0 : i32
    return %c0_i32, %c0_i32_0 : i32, i32
  }
  func.func @transform_3(%arg0: i32) -> (i32, i32) {
    %c0_i32 = arith.constant 0 : i32
    %c0_i32_0 = arith.constant 0 : i32
    %c0_i32_1 = arith.constant 0 : i32
    return %c0_i32, %c0_i32_0 : i32, i32
  }
  func.func @transform_4(%arg0: i32) -> (i32, i32) {
    %c0_i32 = arith.constant 0 : i32
    %c0_i32_0 = arith.constant 0 : i32
    %c0_i32_1 = arith.constant 0 : i32
    return %c0_i32, %c0_i32_0 : i32, i32
  }
  func.func @transform_5(%arg0: i32) -> (i32, i32) {
    %c0_i32 = arith.constant 0 : i32
    %c0_i32_0 = arith.constant 0 : i32
    %c0_i32_1 = arith.constant 0 : i32
    return %c0_i32, %c0_i32_0 : i32, i32
  }
  func.func @transform_6(%arg0: i32) -> (i32, i32) {
    %c0_i32 = arith.constant 0 : i32
    %c0_i32_0 = arith.constant 0 : i32
    %c0_i32_1 = arith.constant 0 : i32
    return %c0_i32, %c0_i32_0 : i32, i32
  }
  func.func @transform_7(%arg0: i32) -> (i32, i32) {
    %c0_i32 = arith.constant 0 : i32
    %c0_i32_0 = arith.constant 0 : i32
    %c0_i32_1 = arith.constant 0 : i32
    return %c0_i32, %c0_i32_0 : i32, i32
  }
  func.func @transform_8(%arg0: i32) -> (i32, i32) {
    %c0_i32 = arith.constant 0 : i32
    %c0_i32_0 = arith.constant 0 : i32
    %c0_i32_1 = arith.constant 0 : i32
    return %c0_i32, %c0_i32_0 : i32, i32
  }
  func.func @transform_9(%arg0: i32) -> (i32, i32) {
    %c0_i32 = arith.constant 0 : i32
    %c0_i32_0 = arith.constant 0 : i32
    return %arg0, %c0_i32 : i32, i32
  }
}

</mosaic_0001>

<bundles_post_ra>
// kernel: tpu_custom_call.1
= control target key start
LH: loop header
LB: loop body
LE: loop exit
PB: predicated region body
PF: predicated region fallthrough
CT: control target
= control target key end

     0   :  { %14 = vsyncpa [#allocation3], 0  ;;  %s751_s0 = inlined_call_operand.vmem [shape: f32[8,16], index: 0, kind: input, shape index: {}]   ;;  %s752_s1 = inlined_call_operand.hbm [shape: f32[8,8], index: 1, kind: input, shape index: {}, may-alias: {1,9}]   ;;  %s753_s2 = inlined_call_operand.vmem [shape: bf16[16,128], index: 2, kind: input, shape index: {}]   ;;  %s754_s3 = inlined_call_operand.vmem [shape: bf16[8,128], index: 3, kind: input, shape index: {}]   ;;  %s755_s4 = inlined_call_operand.vmem [shape: f32[1,128], index: 4, kind: input, shape index: {}]   ;;  %s756_s5 = inlined_call_operand.vmem [shape: bf16[128,128], index: 5, kind: input, shape index: {}]   ;;  %s757_s6 = inlined_call_operand.vmem [shape: f32[1,128], index: 6, kind: input, shape index: {}]   ;;  %s758_s7 = inlined_call_operand.vmem [shape: bf16[128,8], index: 7, kind: input, shape index: {}]   ;;  %s759_s8 = inlined_call_operand.vmem [shape: f32[1,8], index: 8, kind: input, shape index: {}]   ;;  %s760_s9 = inlined_call_operand.hbm [shape: f32[8,8], index: 9, kind: output, shape index: {}, may-alias: {1,9}]  }
   0x1   :  { %15 = vsyncpa [#allocation4], 0  ;;  %s574_s30 = smov [#allocation2]   ;;  %s526_s13 = scalar_lea.hbm %s752_s1, 128 }
   0x2   :  { %s24_s10 = sshll.u32 %s574_s30, 4  ;;  %p527_p0 = scmp.ne.s32.totalorder %s752_s1, %s526_s13  ;;  %s25_s10 = int_to_ptr.vmem [resolvable:$true] %s24_s10 }
   0x3   :  { %p530_p1 = scmp.lt.u32.totalorder %s526_s13, %s752_s1 }
   0x5   :  { %p532_p2 = pnand %p530_p1, %p527_p0 }
   0x7   :  { %535 = shalt.err (!%p532_p2)
}
   0x8   :  { %s536_s18 = scalar_lea.vmem %s25_s10, 128  ;;  %p541_p4 = scmp.lt.s32.totalorder %s25_s10, %s25_s10 }
   0x9   :  { %p537_p3 = scmp.ne.s32.totalorder %s25_s10, %s536_s18  ;;  %p542_p5 = scmp.lt.s32.totalorder %s536_s18, %s536_s18 }
   0xb   :  { %p543_p6 = por %p542_p5, %p541_p4 }
   0xd   :  { %p544_p7 = pnand %p543_p6, %p537_p3 }
   0xf   :  { %547 = shalt.err (!%p544_p7)
}
  0x10   :  { %27 = dma.hbm_to_vmem [thread:$0]  %s752_s1, 128, %s25_s10, [#allocation3]  }
  0x11   :  { %570 = dma.done.wait [#allocation3], 128  }
  0x12   :  { %571 = vsyncadd [#allocation3], 4294967168  ;;  %v575_v0 = vmov 0.0   ;;  %vm576_vm0 = vmmov 0   ;;  %vm57_vm1 = vcmask 1043456   ;;  %v507_v3 = vld [vmem:[%s753_s2] sm:$0xff]  }
  0x13   :  { %451 = vmatprep.subr.bf16.mxu0 %v575_v0  ;;  %457 = vmatprep.subr.bf16.mxu1 %v575_v0  ;;  %v52_v1 = vld [vmem:[%s754_s3] sm:$0xf]  ;;  %vm53_vm2 = vcmask 64512   ;;  %vm107_vm3 = vcmask 130048   ;;  %v509_v9 = vld [vmem:[%s756_s5 + $0x8] sm:$0xff]   ;;  %v510_v10 = vld [vmem:[%s756_s5 + $0x10] sm:$0xff]  }
  0x14   :  { %453 = vmatprep.mubr.msk.bf16.mxu0 %vm576_vm0, %v575_v0  ;;  %459 = vmatprep.mubr.msk.bf16.mxu1 %vm576_vm0, %v575_v0  ;;  %v59_v2 = vsel %vm57_vm1, %v52_v1, 0  ;;  %v652_v4 = vld [vmem:[#allocation2] sm:$0xff]  ;;  %v511_v11 = vld [vmem:[%s756_s5 + $0x18] sm:$0xff]   ;;  %v513_v13 = vld [vmem:[%s756_s5 + $0x28] sm:$0xff]  }
  0x15   :  { %v46_v5 = vld [vmem:[%s751_s0] sm:$0xff]  ;;  %452 = vmatpush3.bf16.msra.mxu0 %v59_v2  ;;  %v51_v6 = vpack.c.bf16 %v652_v4, %v652_v4  ;;  %458 = vmatpush3.bf16.msra.mxu1 %v507_v3  ;;  %v514_v14 = vld [vmem:[%s756_s5 + $0x30] sm:$0xff]   ;;  %v515_v15 = vld [vmem:[%s756_s5 + $0x38] sm:$0xff]  }
  0x16   :  { %v48_v7 = vpack.c.bf16 %v46_v5, %v46_v5  ;;  %v508_v8 = vld [vmem:[%s756_s5] sm:$0xff]   ;;  %463 = vmatprep.subr.bf16.mxu0 %v575_v0  ;;  %483 = vmatprep.subr.bf16.mxu1 %v575_v0  ;;  %v517_v17 = vld [vmem:[%s758_s7 + $0x8] sm:$0xff]   ;;  %v518_v18 = vld [vmem:[%s758_s7 + $0x10] sm:$0xff]  }
  0x17   :  { %v512_v12 = vld [vmem:[%s756_s5 + $0x20] sm:$0xff]   ;;  %v519_v19 = vld [vmem:[%s758_s7 + $0x18] sm:$0xff]   ;;  %v521_v21 = vld [vmem:[%s758_s7 + $0x28] sm:$0xff]  }
  0x18   :  { %454 = vmatmul.mubr.msk.bf16.vlgmr.msra.gmra.mrb[0].mxu0 %vm53_vm2, %v51_v6  ;;  %460 = vmatmul.mubr.msk.bf16.vlgmr.msra.gmra.mrb[0].mxu1 %vm107_vm3, %v48_v7  ;;  %v516_v16 = vld [vmem:[%s758_s7] sm:$0xff]   ;;  %v522_v35 = vld [vmem:[%s758_s7 + $0x30] sm:$0xff]   ;;  %v523_v36 = vld [vmem:[%s758_s7 + $0x38] sm:$0xff]  }
  0x19   :  { %464 = vmatpush3.bf16.msra.mxu0 %v508_v8  ;;  %479 = vmatprep.mubr.msk.bf16.mxu0 %vm576_vm0, %v575_v0  ;;  %v520_v20 = vld [vmem:[%s758_s7 + $0x20] sm:$0xff]  }
  0x1a   :  { %465 = vmatprep.subr.bf16.mxu0 %v575_v0  ;;  %499 = vmatprep.mubr.msk.bf16.mxu1 %vm576_vm0, %v575_v0  ;;  %v409_v25 = vld [vmem:[%s755_s4] ss:$0 sm:$0xff] }
  0x1b   :  { %484 = vmatpush3.bf16.msra.mxu1 %v516_v16  ;;  %v410_v37 = vld [vmem:[%s757_s6] ss:$0 sm:$0xff]  ;;  %s577_s6 = smov [#allocation5]  }
  0x1c   :  { %485 = vmatprep.subr.bf16.mxu1 %v575_v0  ;;  %v419_v45 = vld [vmem:[%s759_s8] ss:$0 sm:$0xff]  ;;  %s397_s7 = sshll.u32 %s577_s6, 4  ;;  %s398_s7 = int_to_ptr.vmem [resolvable:$true] %s397_s7 }
  0x1d   :  { %466 = vmatpush3.bf16.msra.mxu0 %v509_v9  ;;  %s548_s13 = scalar_lea.vmem %s398_s7, 128  ;;  %p553_p9 = scmp.lt.s32.totalorder %s398_s7, %s398_s7 }
  0x1e   :  { %467 = vmatprep.subr.bf16.mxu0 %v575_v0  ;;  %p549_p8 = scmp.ne.s32.totalorder %s398_s7, %s548_s13  ;;  %p554_p10 = scmp.lt.s32.totalorder %s548_s13, %s548_s13 }
  0x1f   :  { %486 = vmatpush3.bf16.msra.mxu1 %v517_v17 }
  0x20   :  { %487 = vmatprep.subr.bf16.mxu1 %v575_v0  ;;  %p555_p11 = por %p554_p10, %p553_p9 }
  0x21   :  { %468 = vmatpush3.bf16.msra.mxu0 %v510_v10 }
  0x22   :  { %469 = vmatprep.subr.bf16.mxu0 %v575_v0  ;;  %p556_p12 = pnand %p555_p11, %p549_p8 }
  0x23   :  { %488 = vmatpush3.bf16.msra.mxu1 %v518_v18 }
  0x24   :  { %489 = vmatprep.subr.bf16.mxu1 %v575_v0 }
  0x25   :  { %470 = vmatpush3.bf16.msra.mxu0 %v511_v11 }
  0x26   :  { %471 = vmatprep.subr.bf16.mxu0 %v575_v0 }
  0x27   :  { %490 = vmatpush3.bf16.msra.mxu1 %v519_v19 }
  0x28   :  { %491 = vmatprep.subr.bf16.mxu1 %v575_v0 }
  0x29   :  { %472 = vmatpush3.bf16.msra.mxu0 %v512_v12 }
  0x2a   :  { %473 = vmatprep.subr.bf16.mxu0 %v575_v0 }
  0x2b   :  { %492 = vmatpush3.bf16.msra.mxu1 %v520_v20 }
  0x2c   :  { %493 = vmatprep.subr.bf16.mxu1 %v575_v0 }
  0x2d   :  { %474 = vmatpush3.bf16.msra.mxu0 %v513_v13 }
  0x2e   :  { %475 = vmatprep.subr.bf16.mxu0 %v575_v0 }
  0x2f   :  { %494 = vmatpush3.bf16.msra.mxu1 %v521_v21 }
  0x30   :  { %495 = vmatprep.subr.bf16.mxu1 %v575_v0 }
  0x31   :  { %476 = vmatpush3.bf16.msra.mxu0 %v514_v14 }
  0x32   :  { %477 = vmatprep.subr.bf16.mxu0 %v575_v0 }
  0x33   :  { %496 = vmatpush3.bf16.msra.mxu1 %v522_v35 }
  0x34   :  { %497 = vmatprep.subr.bf16.mxu1 %v575_v0 }
  0x35   :  { %478 = vmatpush3.bf16.msra.mxu0 %v515_v15 }
  0x37   :  { %498 = vmatpush3.bf16.msra.mxu1 %v523_v36 }
  0xeb   :  { %v95_v22 = vpop.f32.mrb[0].mxu0  ;;  %v145_v24 = vpop.f32.mrb[0].mxu1 }
  0xec   :  { %v455_v23 = vpop.f32.mrb[1].mxu0  ;;  %v146_v26 = vadd.f32 %v145_v24, %v95_v22  ;;  %v461_v28 = vpop.f32.mrb[1].mxu1 }
  0xed   :  { %v98_v27 = vpop.f32.mrb[2].mxu0  ;;  %v148_v30 = vpop.f32.mrb[2].mxu1 }
  0xee   :  { %v456_v29 = vpop.f32.mrb[3].mxu0  ;;  %v158_v31 = vadd.f32 %v409_v25, %v146_v26  ;;  %v462_v32 = vpop.f32.mrb[3].mxu1 }
  0xf0   :  { %v159_v33 = vmax.f32 %v158_v31, 0.0 }
  0xf2   :  { %v160_v34 = vpack.c.bf16 %v159_v33, %v159_v33 }
  0xf4   :  { %480 = vmatmul.mubr.bf16.vlgmr.msra.gmra.mrb[4].mxu0 %v160_v34 }
 0x1c7   :  { %v266_v38 = vpop.f32.mrb[4].mxu0 }
 0x1c8   :  { %v267_v39 = vadd.f32 %v410_v37, %v266_v38  ;;  %v481_v40 = vpop.f32.mrb[5].mxu0 }
 0x1c9   :  { %v269_v41 = vpop.f32.mrb[6].mxu0 }
 0x1ca   :  { %v272_v42 = vmax.f32 %v267_v39, 0.0  ;;  %v482_v43 = vpop.f32.mrb[7].mxu0 }
 0x1cc   :  { %v273_v44 = vpack.c.bf16 %v272_v42, %v272_v42 }
 0x1ce   :  { %500 = vmatmul.mubr.bf16.vlgmr.msra.gmra.mrb[4].mxu1 %v273_v44 }
 0x2a1   :  { %v379_v46 = vpop.f32.mrb[4].mxu1 }
 0x2a2   :  { %v380_v47 = vadd.f32 %v419_v45, %v379_v46  ;;  %v501_v48 = vpop.f32.mrb[5].mxu1 }
 0x2a3   :  { %v382_v49 = vpop.f32.mrb[6].mxu1 }
 0x2a4   :  { %524 = vtanh.f32 %v380_v47  ;;  %v502_v50 = vpop.f32.mrb[7].mxu1 }
 0x2ae   :  { %v525_v51 = vpop.eup %524 }
 0x2af   :  { %v386_v52 = vmul.f32 0.05, %v525_v51 }
 0x2b1   :  { %v387_v53 = vadd.f32 %v386_v52, %v652_v4 }
 0x2b3   :  { %v428_v54 = vclamps-f32 %v387_v53, 1.0 }
 0x2b5   :  { %390 = vst.msk [vmem:[#allocation5] sm:$0xff] %vm53_vm2, %v428_v54 }
 0x2b6   :  { %559 = shalt.err (!%p556_p12)
}
 0x2b7   :  { %s560_s15 = scalar_lea.hbm %s760_s9, 128 }
 0x2b8   :  { %p561_p13 = scmp.ne.s32.totalorder %s760_s9, %s560_s15  ;;  %p564_p0 = scmp.lt.u32.totalorder %s560_s15, %s760_s9 }
 0x2ba   :  { %p566_p1 = pnand %p564_p0, %p561_p13 }
 0x2bc   :  { %569 = shalt.err (!%p566_p1)
}
 0x2bd   :  { %400 = dma.vmem_to_hbm [thread:$0]  %s398_s7, 128, %s760_s9, [#allocation4]  }
 0x2be   :  { %572 = dma.done.wait [#allocation4], 128  }
 0x2bf   :  { %573 = vsyncadd [#allocation4], 4294967168 }
 0x2c0   :  { %404 = vsyncpa [#allocation3], 1 }
 0x2c1   :  { %405 = vsyncpa [#allocation4], 1 }

</bundles_post_ra>
